<compile_context>
chip_gen: v7x
topology: tpu7x:2x2x1
jax: 0.10.0
libtpu: 0.0.40
codegen_flags: <defaults>
</compile_context>

<pallas_src>
import functools
import math

import jax
import jax.numpy as jnp
from jax.experimental import pallas as pl
from jax.experimental.pallas import tpu as pltpu


def film_kernel(x_ref, cond_ref, w_ref, b_ref, o_ref, *, matmul_dtype=None):
    """One grid step: project cond -> (gamma, beta), modulate x.

    x_ref:    (bN, Ct, tile_hw)
    cond_ref: (bN, Cc, tile_hw)
    w_ref:    (2, Ct, Cc)   stacked [Wg, Wb]
    b_ref:    (2, Ct, 1)    stacked [bg, bb]
    o_ref:    (bN, Ct, tile_hw)
    """
    wg = w_ref[0]
    wb = w_ref[1]
    if matmul_dtype is not None:
        wg = wg.astype(matmul_dtype)
        wb = wb.astype(matmul_dtype)
    bg = b_ref[0].astype(jnp.float32)   # (Ct, 1), broadcasts over lanes
    bb = b_ref[1].astype(jnp.float32)

    for b in range(x_ref.shape[0]):     # static, small batch block
        c = cond_ref[b]                 # (Cc, tile_hw)
        if matmul_dtype is not None:
            c = c.astype(matmul_dtype)
        gamma = jnp.tanh(
            jnp.dot(wg, c, preferred_element_type=jnp.float32) + bg)
        beta = jnp.dot(wb, c, preferred_element_type=jnp.float32) + bb
        xb = x_ref[b].astype(jnp.float32)
        o_ref[b] = (xb * (1.0 + gamma) + beta).astype(o_ref.dtype)


def _vmem_budget_and_limit():
    """Generation-aware scratch budget and explicit scoped-VMEM limit."""
    try:
        phys = int(pltpu.get_tpu_info().vmem_capacity_bytes)
    except Exception:
        phys = 64 << 20                          # conservative (v7x-class per-TC)
    budget = (40 << 20) if phys <= (64 << 20) else (64 << 20)
    budget = min(budget, max(phys - (16 << 20), 8 << 20))
    limit = min(max(phys - (8 << 20), 16 << 20), budget + (16 << 20))
    return budget, limit


def _choose_tiling(N, Ct, Cc, hw, itemsize, budget, max_tile=16384):
    """Pick (batch_block, tile_hw) within the VMEM budget.

    Accounts for Pallas double-buffering of every input block AND of the
    constant fused weight/bias blocks.
    """
    fixed = 2 * (2 * Ct * Cc + 2 * Ct) * itemsize          # fused W + b buffers
    avail = max(budget - fixed, 2 << 20)
    per_lane = (Cc + 2 * Ct) * itemsize * 2                 # x + cond + out, per batch-elem
    max_lanes = max(128, (avail // per_lane) // 128 * 128)
    cap = min(max_lanes, max_tile)
    tile_hw = hw if hw <= cap else cap                      # full extent or mult. of 128

    bN = 1
    if tile_hw == hw:
        # Small-block regime: grow the batch block so every grid step moves a
        # meaningful amount of data (amortizes the ~0.35us per-step overhead).
        step_bytes = (Cc + 2 * Ct) * hw * itemsize
        per_batch_vmem = per_lane * hw
        target = 2 << 20
        while (bN < N and step_bytes * bN < target
               and per_batch_vmem * (bN + 1) <= avail):
            bN += 1

    # v7x has 2 TensorCores; with both grid axes parallel, make sure there are
    # at least 2 blocks to shard whenever the problem allows it.
    if pl.cdiv(N, bN) * pl.cdiv(hw, tile_hw) == 1:
        if N >= 2:
            bN = max(1, N // 2)
        elif hw >= 256:
            tile_hw = max(128, ((hw // 2 + 127) // 128) * 128)
    return bN, tile_hw


def film_forward(x, cond, wg, bg, wb, bb, *, tile_hw=None, batch_block=None,
                 matmul_dtype=None):
    """FiLM forward, NCHW-native.

    x:      (N, Ct, H, W)
    cond:   (N, Cc, H, W)
    wg, wb: (Ct, Cc)  Conv2d(1x1) weight with trailing 1x1 squeezed.
    bg, bb: (Ct,)
    Returns (N, Ct, H, W) in x.dtype. For a mem-bound op like this, feeding
    bf16 activations (x/cond) is the biggest single win; compute stays f32.
    """
    N, Ct, H, W = x.shape
    _, Cc, _, _ = cond.shape
    hw = H * W

    # Free metadata reshape: channels land on sublanes, spatial on lanes.
    x3 = x.reshape(N, Ct, hw)
    cond3 = cond.reshape(N, Cc, hw)

    w_fused = jnp.stack([wg, wb], axis=0)                    # (2, Ct, Cc)
    b_fused = jnp.stack([bg, bb], axis=0).reshape(2, Ct, 1)  # (2, Ct, 1)

    itemsize = jnp.dtype(x.dtype).itemsize
    budget, vmem_limit = _vmem_budget_and_limit()
    auto_bn, auto_hw = _choose_tiling(N, Ct, Cc, hw, itemsize, budget)
    bN = batch_block if batch_block is not None else auto_bn
    thw = tile_hw if tile_hw is not None else auto_hw

    grid = (pl.cdiv(N, bN), pl.cdiv(hw, thw))

    cost = pl.CostEstimate(
        flops=2 * N * hw * Cc * (2 * Ct) + 3 * N * hw * Ct,
        transcendentals=N * hw * Ct,
        bytes_accessed=(N * hw * (Cc + 2 * Ct) + 2 * Ct * Cc + 2 * Ct) * itemsize,
    )

    kernel = functools.partial(film_kernel, matmul_dtype=matmul_dtype)

    out3 = pl.pallas_call(
        kernel,
        out_shape=jax.ShapeDtypeStruct((N, Ct, hw), x.dtype),
        grid_spec=pltpu.PrefetchScalarGridSpec(
            num_scalar_prefetch=0,
            grid=grid,
            in_specs=[
                pl.BlockSpec((bN, Ct, thw), lambda n, t: (n, 0, t)),   # x
                pl.BlockSpec((bN, Cc, thw), lambda n, t: (n, 0, t)),   # cond
                pl.BlockSpec((2, Ct, Cc), lambda n, t: (0, 0, 0)),     # [Wg, Wb]
                pl.BlockSpec((2, Ct, 1), lambda n, t: (0, 0, 0)),      # [bg, bb]
            ],
            out_specs=pl.BlockSpec((bN, Ct, thw), lambda n, t: (n, 0, t)),
        ),
        compiler_params=pltpu.CompilerParams(
            dimension_semantics=("parallel", "parallel"),
            vmem_limit_bytes=int(vmem_limit),
        ),
        cost_estimate=cost,
    )(x3, cond3, w_fused, b_fused)

    return out3.reshape(N, Ct, H, W)


def init_film_params(key, cond_ch, target_ch):
    """Conv2d(1x1)-style init: U(-1/sqrt(fan_in), 1/sqrt(fan_in)).

    Weights stored as (C_out, C_in) == Conv2d weight (C_out, C_in, 1, 1) squeezed.
    """
    kg, kbg, kb, kbb = jax.random.split(key, 4)
    bound = 1.0 / math.sqrt(cond_ch)  # fan_in = cond_ch * 1 * 1
    wg = jax.random.uniform(kg, (target_ch, cond_ch), jnp.float32, -bound, bound)
    bg = jax.random.uniform(kbg, (target_ch,), jnp.float32, -bound, bound)
    wb = jax.random.uniform(kb, (target_ch, cond_ch), jnp.float32, -bound, bound)
    bb = jax.random.uniform(kbb, (target_ch,), jnp.float32, -bound, bound)
    return wg, bg, wb, bb


if __name__ == "__main__":
    key = jax.random.PRNGKey(0)
    k_x, k_c, k_p = jax.random.split(key, 3)

    N, C_target, C_cond, H, W = 2, 4, 8, 16, 16
    x = jax.random.normal(k_x, (N, C_target, H, W), jnp.float32)
    cond = jax.random.normal(k_c, (N, C_cond, H, W), jnp.float32)
    wg, bg, wb, bb = init_film_params(k_p, C_cond, C_target)

    out = film_forward(x, cond, wg, bg, wb, bb)
    out = jax.block_until_ready(out)

    # Pure-JAX reference (1x1 conv == einsum over channels; weights are (Cout, Cin)).
    gamma_ref = jnp.tanh(
        jnp.einsum("nchw,dc->ndhw", cond, wg,
                   precision=jax.lax.Precision.HIGHEST)
        + bg[None, :, None, None])
    beta_ref = (jnp.einsum("nchw,dc->ndhw", cond, wb,
                           precision=jax.lax.Precision.HIGHEST)
                + bb[None, :, None, None])
    ref = x * (1.0 + gamma_ref) + beta_ref

    assert out.shape == (N, C_target, H, W)
    err = float(jnp.max(jnp.abs(out - ref)))
    assert jnp.allclose(out, ref, atol=2e-3, rtol=2e-3), f"max abs err={err}"
    print("KERNEL_OK")
</pallas_src>

<mosaic_0001>
module attributes {stable_mosaic.version = 11 : i64} {
  func.func @film_kernel(%arg0: i32, %arg1: i32, %arg2: memref<1x4x256xf32, #tpu.memory_space<vmem>>, %arg3: memref<1x8x256xf32, #tpu.memory_space<vmem>>, %arg4: memref<2x4x8xf32, #tpu.memory_space<vmem>>, %arg5: memref<2x4x1xf32, #tpu.memory_space<vmem>>, %arg6: memref<1x4x256xf32, #tpu.memory_space<vmem>>) attributes {dimension_semantics = [#tpu.dimension_semantics<parallel>, #tpu.dimension_semantics<parallel>], iteration_bounds = array<i64: 2, 1>, scalar_prefetch = 0 : i64, scratch_operands = 0 : i64, tpu.core_type = #tpu.core_type<tc>, window_params = [{transform_indices = @transform_0, window_bounds = array<i64: 1, 4, 256>}, {transform_indices = @transform_1, window_bounds = array<i64: 1, 8, 256>}, {pipeline_mode = #tpu.pipeline_mode<synchronous>, transform_indices = @transform_2, window_bounds = array<i64: 2, 4, 8>}, {pipeline_mode = #tpu.pipeline_mode<synchronous>, transform_indices = @transform_3, window_bounds = array<i64: 2, 4, 1>}, {transform_indices = @transform_4, window_bounds = array<i64: 1, 4, 256>}]} {
    %c0 = arith.constant 0 : index
    %c0_0 = arith.constant 0 : index
    %c0_1 = arith.constant 0 : index
    %0 = vector.load %arg4[%c0, %c0_0, %c0_1] : memref<2x4x8xf32, #tpu.memory_space<vmem>>, vector<1x4x8xf32>
    %1 = vector.shape_cast %0 : vector<1x4x8xf32> to vector<4x8xf32>
    %c1 = arith.constant 1 : index
    %c0_2 = arith.constant 0 : index
    %c0_3 = arith.constant 0 : index
    %2 = vector.load %arg4[%c1, %c0_2, %c0_3] : memref<2x4x8xf32, #tpu.memory_space<vmem>>, vector<1x4x8xf32>
    %3 = vector.shape_cast %2 : vector<1x4x8xf32> to vector<4x8xf32>
    %c0_4 = arith.constant 0 : index
    %c0_5 = arith.constant 0 : index
    %c0_6 = arith.constant 0 : index
    %4 = vector.load %arg5[%c0_4, %c0_5, %c0_6] : memref<2x4x1xf32, #tpu.memory_space<vmem>>, vector<1x4x1xf32>
    %5 = vector.shape_cast %4 : vector<1x4x1xf32> to vector<4x1xf32>
    %c1_7 = arith.constant 1 : index
    %c0_8 = arith.constant 0 : index
    %c0_9 = arith.constant 0 : index
    %6 = vector.load %arg5[%c1_7, %c0_8, %c0_9] : memref<2x4x1xf32, #tpu.memory_space<vmem>>, vector<1x4x1xf32>
    %7 = vector.shape_cast %6 : vector<1x4x1xf32> to vector<4x1xf32>
    %c0_10 = arith.constant 0 : index
    %c0_11 = arith.constant 0 : index
    %c0_12 = arith.constant 0 : index
    %8 = vector.load %arg3[%c0_10, %c0_11, %c0_12] : memref<1x8x256xf32, #tpu.memory_space<vmem>>, vector<1x8x256xf32>
    %9 = vector.shape_cast %8 : vector<1x8x256xf32> to vector<8x256xf32>
    %cst = arith.constant dense<0.000000e+00> : vector<4x256xf32>
    %10 = tpu.matmul %1, %9, %cst {dimension_numbers = #tpu.dot_dimension_numbers<[1], [0], [0], [1], [0, 0, 1, 1], [], []>} : vector<4x8xf32>, vector<8x256xf32>, vector<4x256xf32> -> vector<4x256xf32>
    %11 = vector.broadcast %5 : vector<4x1xf32> to vector<4x256xf32>
    %12 = arith.addf %10, %11 : vector<4x256xf32>
    %13 = math.tanh %12 : vector<4x256xf32>
    %cst_13 = arith.constant dense<0.000000e+00> : vector<4x256xf32>
    %14 = tpu.matmul %3, %9, %cst_13 {dimension_numbers = #tpu.dot_dimension_numbers<[1], [0], [0], [1], [0, 0, 1, 1], [], []>} : vector<4x8xf32>, vector<8x256xf32>, vector<4x256xf32> -> vector<4x256xf32>
    %15 = vector.broadcast %7 : vector<4x1xf32> to vector<4x256xf32>
    %16 = arith.addf %14, %15 : vector<4x256xf32>
    %c0_14 = arith.constant 0 : index
    %c0_15 = arith.constant 0 : index
    %c0_16 = arith.constant 0 : index
    %17 = vector.load %arg2[%c0_14, %c0_15, %c0_16] : memref<1x4x256xf32, #tpu.memory_space<vmem>>, vector<1x4x256xf32>
    %18 = vector.shape_cast %17 : vector<1x4x256xf32> to vector<4x256xf32>
    %cst_17 = arith.constant 1.000000e+00 : f32
    %19 = vector.broadcast %cst_17 : f32 to vector<4x256xf32>
    %20 = arith.addf %19, %13 : vector<4x256xf32>
    %21 = arith.mulf %18, %20 : vector<4x256xf32>
    %22 = arith.addf %21, %16 : vector<4x256xf32>
    %c0_18 = arith.constant 0 : index
    %c0_19 = arith.constant 0 : index
    %c0_20 = arith.constant 0 : index
    %23 = vector.load %arg6[%c0_18, %c0_19, %c0_20] : memref<1x4x256xf32, #tpu.memory_space<vmem>>, vector<1x4x256xf32>
    %24 = vector.shape_cast %23 : vector<1x4x256xf32> to vector<4x256xf32>
    %25 = vector.shape_cast %22 : vector<4x256xf32> to vector<1x4x256xf32>
    tpu.vector_store %arg6[%c0_18, %c0_19, %c0_20], %25 {strides = array<i32>} : memref<1x4x256xf32, #tpu.memory_space<vmem>>, vector<1x4x256xf32>,
    return
  }
  func.func @transform_0(%arg0: i32, %arg1: i32) -> (i32, i32, i32) {
    %c0_i32 = arith.constant 0 : i32
    %c0_i32_0 = arith.constant 0 : i32
    return %arg0, %c0_i32, %arg1 : i32, i32, i32
  }
  func.func @transform_1(%arg0: i32, %arg1: i32) -> (i32, i32, i32) {
    %c0_i32 = arith.constant 0 : i32
    %c0_i32_0 = arith.constant 0 : i32
    return %arg0, %c0_i32, %arg1 : i32, i32, i32
  }
  func.func @transform_2(%arg0: i32, %arg1: i32) -> (i32, i32, i32) {
    %c0_i32 = arith.constant 0 : i32
    %c0_i32_0 = arith.constant 0 : i32
    %c0_i32_1 = arith.constant 0 : i32
    %c0_i32_2 = arith.constant 0 : i32
    return %c0_i32, %c0_i32_0, %c0_i32_1 : i32, i32, i32
  }
  func.func @transform_3(%arg0: i32, %arg1: i32) -> (i32, i32, i32) {
    %c0_i32 = arith.constant 0 : i32
    %c0_i32_0 = arith.constant 0 : i32
    %c0_i32_1 = arith.constant 0 : i32
    %c0_i32_2 = arith.constant 0 : i32
    return %c0_i32, %c0_i32_0, %c0_i32_1 : i32, i32, i32
  }
  func.func @transform_4(%arg0: i32, %arg1: i32) -> (i32, i32, i32) {
    %c0_i32 = arith.constant 0 : i32
    %c0_i32_0 = arith.constant 0 : i32
    return %arg0, %c0_i32, %arg1 : i32, i32, i32
  }
}

</mosaic_0001>

<bundles_post_ra>
// kernel: tpu_custom_call.1
= control target key start
LH: loop header
LB: loop body
LE: loop exit
PB: predicated region body
PF: predicated region fallthrough
CT: control target
= control target key end

     0   :  { %9 = vsyncpa [#allocation3], 0  ;;  %s1099_s0 = inlined_call_operand.hbm [shape: f32[2,4,256], index: 0, kind: input, shape index: {}]   ;;  %s1100_s1 = inlined_call_operand.hbm [shape: f32[2,8,256], index: 1, kind: input, shape index: {}]   ;;  %s1101_s2 = inlined_call_operand.vmem [shape: f32[2,4,8], index: 2, kind: input, shape index: {}]   ;;  %s1102_s3 = inlined_call_operand.vmem [shape: f32[2,4,1], index: 3, kind: input, shape index: {}]   ;;  %s1103_s4 = inlined_call_operand.hbm [shape: f32[2,4,256], index: 4, kind: output, shape index: {}]  }
   0x1   :  { %11 = vsyncpa [#allocation3 + $0x1], 0 }
   0x2   :  { %12 = vsyncpa [#allocation6], 0 }
   0x3   :  { %14 = vsyncpa [#allocation6 + $0x1], 0 }
   0x4   :  { %15 = vsyncpa [#allocation4], 0 }
   0x5   :  { %17 = vsyncpa [#allocation4 + $0x1], 0  ;;  %s865_s15 = smov 0   ;;  %s867_s16 = smov 0  }
   0x6   :  { %s869_s17 = smov 0   ;;  %s871_s18 = smov 0  }
   0x7   :  { %s873_s19 = smov 0   ;;  %s875_s20 = smov 0  }
   0x8 LB: > { %s587_s21 = sadd.s32 4294967295, %s833_s20   ;;  %s588_s22 = sadd.s32 4294967294, %s833_s20   ;;  %s833_s20 = sphi %s875_s20, %s23_s20   ;;  %s829_s19 = sphi %s873_s19, %s1123_s19   ;;  %s825_s18 = sphi %s871_s18, %s1122_s18   ;;  %s821_s17 = sphi %s869_s17, %s1121_s17   ;;  %s817_s16 = sphi %s867_s16, %s1120_s16   ;;  %s813_s15 = sphi %s865_s15, %s1119_s15  }
   0x9   : > { %s35_s23 = sadd.s32 1, %s829_s19  ;;  %s44_s24 = sadd.s32 1, %s821_s17 }
   0xa   : > { %p37_p0 = scmp.ge.s32.totalorder %s35_s23, 2  ;;  %p51_p1 = scmp.ne.s32.totalorder %s821_s17, %s817_s16 }
   0xb   : > { %p52_p2 = scmp.eq.s32.totalorder %s833_s20, 0  ;;  %p57_p3 = scmp.ne.s32.totalorder %s817_s16, %s813_s15 }
   0xc   : > { %s1125_s23 = smov (%p37_p0, %s35_s23), 0  ;;  %p58_p5 = scmp.eq.s32.totalorder %s587_s21, 0 }
   0xd   : > { %p906_p4 = por %p52_p2, %p51_p1  ;;  %s39_s26 = ssub.s32 %s829_s19, %s1125_s23 }
   0xe   : > { %p153_p6 = scmp.eq.s32.totalorder %s587_s21, 1  ;;  %p42_p7 = scmp.eq.s32.totalorder %s39_s26, 0 }
   0xf   : > { %p912_p8 = por %p58_p5, %p57_p3  ;;  %p159_p10 = scmp.eq.s32.totalorder %s588_s22, 1 }
  0x10   : > { %p916_p9 = por %p153_p6, %p51_p1  ;;  %p630_p13 = scmp.lt.s32.totalorder %s833_s20, 2 }
  0x11   : > { %s1107_s27 = scalar_select %p912_p8, 1, 0 }
  0x12   : > { %s1108_s28 = scalar_select %p916_p9, 1, 0 }
  0x13   : > { %s921_s29 = scalar_select %p42_p7, %s821_s17, %s44_s24  }
  0x14   : > { %p923_p11 = por %p159_p10, %p57_p3  ;;  %s930_s5 = sand.u32 1, %s821_s17  }
  0x15   : > { %s591_s6 = sshll.u32 %s930_s5, 3  ;;  %s610_s7 = sshll.u32 %s829_s19, 7 }
  0x16   : > { %s1109_s30 = scalar_select %p923_p11, 1, 0 }
  0x17   : > { %s937_s10 = scalar_lea.hbm %s1099_s0, %s610_s7  ;;  %s189_s11 = scalar_lea.vmem [#allocation2], %s591_s6 }
  0x18   : > { %s199_s12 = sshll.u32 %s189_s11, 4  ;;  %p943_p0 = pnand %p630_p13, %p906_p4  ;;  %s939_s12 = int_to_ptr.vmem [resolvable:$true] %s199_s12 }
  0x19   : > { %s186_s14 = scalar_lea.sflag [#allocation3], %s930_s5  ;;  %s687_s21 = scalar_lea.hbm %s937_s10, 128 }
  0x1a   : > { %p688_p3 = scmp.ne.s32.totalorder %s937_s10, %s687_s21  ;;  %p689_p5 = pneg %p943_p0 }
  0x1b   : > { %s692_s25 = scalar_lea.hbm %s1099_s0, 256  ;;  %p693_p4 = scmp.lt.u32.totalorder %s937_s10, %s1099_s0 }
  0x1c   : > { %p690_p6 = pnand %p689_p5, %p688_p3  ;;  %p694_p10 = scmp.lt.u32.totalorder %s692_s25, %s687_s21 }
  0x1d   : > { %p696_p12 = scmp.lt.u32.totalorder %s687_s21, %s937_s10 }
  0x1e   : > { %p691_p7 = pneg %p690_p6  ;;  %p695_p13 = por %p694_p10, %p693_p4 }
  0x20   : > { %p697_p1 = por %p696_p12, %p695_p13 }
  0x22   : > { %p698_p2 = pnand %p697_p1, %p691_p7 }
  0x24   : > { %701 = shalt.err (!%p698_p2)
}
  0x25   : > { %s702_s7 = scalar_lea.vmem %s939_s12, 128  ;;  %s835_s8 = smov [#allocation2]  }
  0x26   : > { %p703_p3 = scmp.ne.s32.totalorder %s939_s12, %s702_s7  ;;  %s707_s9 = sshll.u32 %s835_s8, 4  ;;  %s708_s9 = int_to_ptr.vmem [resolvable:$false] %s707_s9 }
  0x27   : > { %s709_s11 = scalar_lea.vmem %s708_s9, 256  ;;  %p710_p9 = scmp.lt.s32.totalorder %s939_s12, %s708_s9 }
  0x28   : > { %p705_p6 = pnand %p703_p3, %p689_p5  ;;  %p711_p4 = scmp.lt.s32.totalorder %s709_s11, %s702_s7 }
  0x2a   : > { %p706_p11 = pneg %p705_p6  ;;  %p712_p10 = por %p711_p4, %p710_p9 }
  0x2c   : > { %p713_p12 = pnand %p712_p10, %p706_p11 }
  0x2e   : > { %716 = shalt.err (!%p713_p12)
}
  0x2f   : > { %622 = dma.hbm_to_vmem [thread:$0]  (!%p943_p0), %s937_s10, 128, %s939_s12, %s186_s14  }
  0x30   : > { %p1111_p1 = scmp.lt.s32.totalorder %s833_s20, 3  ;;  %p1112_p2 = scmp.ge.s32.totalorder %s833_s20, 1 }
  0x31   : > { %s594_s22 = sshll.u32 %s930_s5, 4  ;;  %s611_s24 = sshll.u32 %s829_s19, 8 }
  0x32   : > { %p979_p7 = pnand %p1112_p2, %p1111_p1  ;;  %s988_s6 = scalar_lea.hbm %s1100_s1, %s611_s24 }
  0x33   : > { %s210_s7 = scalar_lea.vmem [#allocation5], %s594_s22  ;;  %s207_s10 = scalar_lea.sflag [#allocation6], %s930_s5 }
  0x34   : > { %s1113_s21 = scalar_select %p979_p7, 1, 0 }
  0x35   : > { %s220_s8 = sshll.u32 %s210_s7, 4  ;;  %s717_s12 = scalar_lea.hbm %s988_s6, 256  ;;  %s221_s8 = int_to_ptr.vmem [resolvable:$true] %s220_s8 }
  0x36   : > { %p718_p9 = scmp.ne.s32.totalorder %s988_s6, %s717_s12  ;;  %s722_s11 = scalar_lea.hbm %s1100_s1, 512 }
  0x37   : > { %p723_p3 = scmp.lt.u32.totalorder %s988_s6, %s1100_s1  ;;  %p724_p6 = scmp.lt.u32.totalorder %s722_s11, %s717_s12 }
  0x38   : > { %p720_p11 = pnand %p718_p9, %p689_p5  ;;  %p726_p10 = scmp.lt.u32.totalorder %s717_s12, %s988_s6 }
  0x39   : > { %p725_p4 = por %p724_p6, %p723_p3 }
  0x3a   : > { %p721_p13 = pneg %p720_p11 }
  0x3b   : > { %p727_p12 = por %p726_p10, %p725_p4 }
  0x3d   : > { %p728_p1 = pnand %p727_p12, %p721_p13 }
  0x3f   : > { %731 = shalt.err (!%p728_p1)
}
  0x40   : > { %s732_s5 = scalar_lea.vmem %s221_s8, 256  ;;  %s836_s22 = smov [#allocation5]  }
  0x41   : > { %p733_p2 = scmp.ne.s32.totalorder %s221_s8, %s732_s5  ;;  %s737_s26 = sshll.u32 %s836_s22, 4  ;;  %s738_s26 = int_to_ptr.vmem [resolvable:$false] %s737_s26 }
  0x42   : > { %s739_s7 = scalar_lea.vmem %s738_s26, 512  ;;  %p740_p8 = scmp.lt.s32.totalorder %s221_s8, %s738_s26 }
  0x43   : > { %p735_p9 = pnand %p733_p2, %p689_p5  ;;  %p741_p7 = scmp.lt.s32.totalorder %s739_s7, %s732_s5 }
  0x45   : > { %p736_p11 = pneg %p735_p9  ;;  %p742_p3 = por %p741_p7, %p740_p8 }
  0x47   : > { %p743_p6 = pnand %p742_p3, %p736_p11 }
  0x49   : > { %746 = shalt.err (!%p743_p6)
}
  0x4a   : > { %625 = dma.hbm_to_vmem [thread:$0]  (!%p943_p0), %s988_s6, 256, %s221_s8, %s207_s10  }
  0x4b   : > { %p1114_p13 = scmp.ne.s32.totalorder %s1113_s21, 0 }
  0x4c   : > { %s1013_s12 = sand.u32 (!%p1114_p13), 1, %s817_s16   ;;  %p1115_p8 = scmp.ne.s32.totalorder (!%p1114_p13), %s1107_s27, 0 }
  0x4d   : > { %229 = sbr.rel (%p1114_p13) target bundleno = 340 (0x154), region = 36  ;;  %s598_s14 = sshll.u32 (!%p1114_p13), %s1013_s12, 3 }
  0x4e   : > { %s232_s9 = scalar_lea.sflag (!%p1114_p13), [#allocation3], %s1013_s12  ;;  %s1019_s11 = scalar_lea.vmem (!%p1114_p13), [#allocation2], %s598_s14 }
  0x54   : > { %800 = dma.done.wait (%p1115_p8), %s232_s9, 128  }
  0x55   : > { %802 = vsyncadd (%p1115_p8), %s232_s9, 4294967168  ;;  %s599_s13 = sshll.u32 %s1013_s12, 4  ;;  %s241_s21 = scalar_lea.sflag [#allocation6], %s1013_s12 }
  0x56   : > { %s244_s6 = scalar_lea.vmem [#allocation5], %s599_s13 }
  0x57   : > { %804 = dma.done.wait (%p1115_p8), %s241_s21, 256  }
  0x58   : > { %806 = vsyncadd (%p1115_p8), %s241_s21, 4294967040  ;;  %v837_v0 = vmov 0.0   ;;  %v838_v1 = vmov 0   ;;  %v284_v2 = vld [vmem:[%s244_s6 + $0x8] sm:$0xff]  ;;  %v283_v3 = vld [vmem:[%s244_s6] sm:$0xff]  ;;  %vm290_vm0 = vcmask 64512  }
  0x59   : > { %358 = vmatprep.mubr.f32.mxu0 %v837_v0  ;;  %439 = vmatprep.mubr.f32.mxu1 %v837_v0  ;;  %v277_v4 = vld [vmem:[%s1101_s2] sm:$0xf]  ;;  %v601_v5 = vld [vmem:[%s1101_s2 + $0x4] sm:$0xf]  ;;  %s612_s7 = sshll.u32 %s825_s18, 7  ;;  %s273_s9 = scalar_lea.vmem [#allocation7], %s598_s14 }
  0x5a   : > { %682 = vset.pattern.permute.xlu0 %v838_v1  ;;  %294 = vmatprep.subr.mxu0 %v284_v2  ;;  %v280_v6 = vld [vmem:[%s1102_s3] sm:$0xf]  ;;  %v602_v7 = vld [vmem:[%s1102_s3 + $0x4] sm:$0xf]  ;;  %s477_s13 = sshll.u32 %s273_s9, 4  ;;  %s1050_s8 = scalar_lea.hbm %s1103_s4, %s612_s7  ;;  %s1052_s13 = int_to_ptr.vmem [resolvable:$true] %s477_s13 }
  0x5b   : > { %375 = vmatprep.subr.mxu1 %v284_v2  ;;  %295 = vmatpush1.msra.mxu0 %v283_v3  ;;  %v446_v23 = vld [vmem:[%s1019_s11] sm:$0xff]  ;;  %s461_s10 = scalar_lea.sflag [#allocation4], %s1013_s12  ;;  %s747_s11 = scalar_lea.vmem %s1052_s13, 128 }
  0x5c   : > { %376 = vmatpush1.msra.mxu1 %v283_v3  ;;  %603 = vmatmul.mubr.msk.f32.vlgmr.msra.gmra.mrb[0].mxu0 %vm290_vm0, %v277_v4  ;;  %p748_p0 = scmp.ne.s32.totalorder %s1052_s13, %s747_s11  ;;  %p1116_p5 = scmp.ne.s32.totalorder %s1108_s28, 0 }
  0x5d   : > { %604 = vmatmul.mubr.msk.f32.vlgmr.msra.gmra.mrb[0].mxu1 %vm290_vm0, %v601_v5  ;;  %287 = vperm.xlu0 %682, %v280_v6   ;;  %s839_s18 = smov [#allocation7]  }
  0x5e   : > { %p749_p7 = pnand %p748_p0, %p1116_p5  ;;  %s751_s14 = sshll.u32 %s839_s18, 4  ;;  %s752_s14 = int_to_ptr.vmem [resolvable:$false] %s751_s14 }
  0x5f   : > { %s753_s24 = scalar_lea.vmem %s752_s14, 256  ;;  %p754_p10 = scmp.lt.s32.totalorder %s1052_s13, %s752_s14 }
  0x60   : > { %p750_p4 = pneg %p749_p7  ;;  %p755_p12 = scmp.lt.s32.totalorder %s753_s24, %s747_s11 }
  0x61   : > { %369 = vperm.xlu0 %682, %v602_v7  }
  0x62   : > { %p756_p1 = por %p755_p12, %p754_p10 }
  0x64   : > { %p757_p2 = pnand %p756_p1, %p750_p4 }
  0xdc   : > { %v288_v8 = vpop.permute.xlu0 %287 }
  0xe0   : > { %v370_v9 = vpop.permute.xlu0 %369 }
 0x12f   : > { %v360_v10 = vpop.f32.mrb[0].mxu0 }
 0x130   : > { %v441_v11 = vpop.f32.mrb[0].mxu1  ;;  %v361_v12 = vadd.f32 %v360_v10, %v288_v8  ;;  %v362_v14 = vpop.f32.mrb[1].mxu0 }
 0x131   : > { %v442_v13 = vadd.f32 %v441_v11, %v370_v9  ;;  %v443_v15 = vpop.f32.mrb[1].mxu1  ;;  %v363_v16 = vadd.f32 %v362_v14, %v288_v8 }
 0x132   : > { %v444_v17 = vadd.f32 %v443_v15, %v370_v9  ;;  %683 = vtanh.f32 %v361_v12 }
 0x133   : > { %685 = vtanh.f32 %v363_v16 }
 0x134   : > { %v456_v18 = vcombine.low %v442_v13, %v444_v17 }
 0x13c   : > { %v684_v19 = vpop.eup %683 }
 0x13d   : > { %v686_v20 = vpop.eup %685  ;;  %v447_v21 = vadd.f32 1.0, %v684_v19 }
 0x13e   : > { %v448_v22 = vadd.f32 1.0, %v686_v20 }
 0x140   : > { %v451_v24 = vcombine.low %v447_v21, %v448_v22 }
 0x142   : > { %v453_v25 = vmul.f32 %v451_v24, %v446_v23 }
 0x144   : > { %v458_v26 = vadd.f32 %v456_v18, %v453_v25 }
 0x146   : > { %459 = vst [vmem:[%s273_s9] sm:$0xff] %v458_v26 }
 0x147   : > { %760 = shalt.err (!%p757_p2)
}
 0x148   : > { %s761_s12 = scalar_lea.hbm %s1050_s8, 128  ;;  %s765_s5 = scalar_lea.hbm %s1103_s4, 256 }
 0x149   : > { %p762_p9 = scmp.ne.s32.totalorder %s1050_s8, %s761_s12  ;;  %p766_p6 = scmp.lt.u32.totalorder %s1050_s8, %s1103_s4 }
 0x14a   : > { %p767_p13 = scmp.lt.u32.totalorder %s765_s5, %s761_s12  ;;  %p769_p0 = scmp.lt.u32.totalorder %s761_s12, %s1050_s8 }
 0x14b   : > { %p763_p11 = pnand %p762_p9, %p1116_p5 }
 0x14c   : > { %p768_p8 = por %p767_p13, %p766_p6 }
 0x14d   : > { %p764_p3 = pneg %p763_p11 }
 0x14e   : > { %p770_p7 = por %p769_p0, %p768_p8 }
 0x150   : > { %p771_p4 = pnand %p770_p7, %p764_p3 }
 0x152   : > { %774 = shalt.err (!%p771_p4)
}
 0x153   : > { %617 = dma.vmem_to_hbm [thread:$0]  (%p1116_p5), %s1052_s13, 128, %s1050_s8, %s461_s10  }
 0x154 PF: > { %s489_s7 = sand.u32 1, %s813_s15   ;;  %p1117_p10 = scmp.ne.s32.totalorder %s1109_s30, 0 }
 0x155   : > { %p1118_p12 = scmp.ge.s32.totalorder %s833_s20, 2  ;;  %s490_s9 = scalar_lea.sflag [#allocation4], %s489_s7 }
 0x157   : > { %p627_p1 = pnand %p1118_p12, %p1117_p10 }
 0x159   : > { %808 = dma.done.wait (!%p627_p1), %s490_s9, 128  }
 0x15a   : > { %810 = vsyncadd (!%p627_p1), %s490_s9, 4294967168  ;;  %s23_s20 = sadd.s32 1, %s833_s20   ;;  %s1119_s15 = smov %s817_s16 }
 0x15b   : > { %p20_p2 = scmp.ge.s32.totalorder %s23_s20, 4   ;;  %s1120_s16 = smov %s821_s17 }
 0x15c   : > { %s1121_s17 = smov %s921_s29  ;;  %s1122_s18 = smov %s829_s19 }
 0x15d   : > { %s1123_s19 = smov %s1125_s23  ;;  %22 = sbr.rel (!%p20_p2) target bundleno = 8 (0x8), region = 96 }
 0x164   :  { %495 = vsyncpa [#allocation3], 1 }
 0x165   :  { %497 = vsyncpa [#allocation3 + $0x1], 1 }
 0x166   :  { %498 = vsyncpa [#allocation6], 1 }
 0x167   :  { %500 = vsyncpa [#allocation6 + $0x1], 1 }
 0x168   :  { %501 = vsyncpa [#allocation4], 1 }
 0x169   :  { %503 = vsyncpa [#allocation4 + $0x1], 1 }

</bundles_post_ra>
